<compile_context>
chip_gen: v7x
topology: tpu7x:2x2x1
jax: 0.10.0
libtpu: 0.0.40
codegen_flags: <defaults>
</compile_context>

<pallas_src>
import jax
import jax.numpy as jnp
from jax.experimental import pallas as pl
from jax.experimental.pallas import tpu as pltpu


def _linear_kernel(x_ref, w_ref, b_ref, o_ref):
    # y[j, 0] = sum_f x[j, f] * w[0, f] + b
    # VPU multiply (w row broadcast over sublanes) + XLU lane reduction,
    # accumulated in f32 regardless of input dtype.
    prod = x_ref[...].astype(jnp.float32) * w_ref[...].astype(jnp.float32)  # (TB, F)
    row_sum = jnp.sum(prod, axis=-1, keepdims=True)                          # (TB, 1)
    o_ref[...] = (row_sum + b_ref[0]).astype(o_ref.dtype)                    # scalar bias from SMEM


def _round_up(v, m):
    return (v + m - 1) // m * m


def simple_nn_forward(x, weight, bias, *, block_b=128):
    """Forward pass of SimpleNN: y = x @ weight.T + bias.

    x:      [B, F]  float32 or bfloat16 (bf16 recommended: halves HBM traffic)
    weight: [1, F]  PyTorch nn.Linear layout (used as-is, no transpose)
    bias:   [1]     kept as an f32 scalar in SMEM
    returns [B, 1]  float32
    """
    B, F = x.shape
    assert weight.shape == (1, F)
    assert bias.shape == (1,)

    # Batch tile: whole array if small, otherwise block_b (multiple of 8).
    tb = B if B <= block_b else block_b
    grid = (pl.cdiv(B, tb),)

    bias = bias.astype(jnp.float32)

    # Explicit VMEM budget (double-buffered x and out tiles + resident weight),
    # with lane/sublane padding accounted for; 2x headroom, capped at 32 MiB
    # (well under v7x's 64 MiB per-core VMEM; v5e/v6e have 128 MiB).
    x_buf = 2 * _round_up(tb, 8) * _round_up(F, 128) * x.dtype.itemsize
    w_buf = _round_up(1, 8) * _round_up(F, 128) * weight.dtype.itemsize
    o_buf = 2 * _round_up(tb, 8) * _round_up(1, 128) * 4
    vmem_limit = int(min(max(2 * (x_buf + w_buf + o_buf), 1 << 20), 32 << 20))

    out = pl.pallas_call(
        _linear_kernel,
        out_shape=jax.ShapeDtypeStruct((B, 1), jnp.float32),
        grid=grid,
        in_specs=[
            pl.BlockSpec((tb, F), lambda i: (i, 0)),                # x: tiled over batch
            pl.BlockSpec((1, F), lambda i: (0, 0)),                 # weight row: resident in VMEM
            pl.BlockSpec(memory_space=pltpu.MemorySpace.SMEM),      # bias: SMEM scalar
        ],
        out_specs=pl.BlockSpec((tb, 1), lambda i: (i, 0)),
        compiler_params=pltpu.CompilerParams(
            dimension_semantics=("parallel",),   # shard batch tiles across TCs (v7x)
            vmem_limit_bytes=vmem_limit,
        ),
    )(x, weight, bias)

    return out


if __name__ == "__main__":
    # Small shapes consistent with the module: in_features=32, out_features=1.
    # Batch of 256 so the grid actually has >1 tile (2 x 128) and pipelines.
    B, F = 256, 32
    key = jax.random.PRNGKey(0)
    k_x, k_w, k_b = jax.random.split(key, 3)

    x = jax.random.normal(k_x, (B, F), dtype=jnp.float32)

    # Deterministic param init mimicking nn.Linear: U(-1/sqrt(F), 1/sqrt(F)).
    bound = 1.0 / (F ** 0.5)
    weight = jax.random.uniform(k_w, (1, F), minval=-bound, maxval=bound,
                                dtype=jnp.float32)
    bias = jax.random.uniform(k_b, (1,), minval=-bound, maxval=bound,
                              dtype=jnp.float32)

    # Feed bf16 activations/weights (memory-bound kernel); accumulate f32 inside.
    x_bf = x.astype(jnp.bfloat16)
    w_bf = weight.astype(jnp.bfloat16)

    out = simple_nn_forward(x_bf, w_bf, bias)
    out = jax.block_until_ready(out)

    # Plain-JAX reference on the same (bf16-quantized) inputs, f32 math.
    ref = jnp.sum(x_bf.astype(jnp.float32) * w_bf.astype(jnp.float32),
                  axis=-1, keepdims=True) + bias
    assert out.shape == (B, 1)
    assert jnp.allclose(out, ref, atol=1e-4, rtol=1e-4)

    print("KERNEL_OK")
</pallas_src>

<mosaic_0001>
module attributes {stable_mosaic.version = 11 : i64} {
  func.func @_linear_kernel(%arg0: i32, %arg1: memref<128x32xbf16, #tpu.memory_space<vmem>>, %arg2: memref<1x32xbf16, #tpu.memory_space<vmem>>, %arg3: memref<1xf32, #tpu.memory_space<smem>>, %arg4: memref<128x1xf32, #tpu.memory_space<vmem>>) attributes {dimension_semantics = [#tpu.dimension_semantics<parallel>], iteration_bounds = array<i64: 2>, scalar_prefetch = 0 : i64, scratch_operands = 0 : i64, tpu.core_type = #tpu.core_type<tc>, window_params = [{transform_indices = @transform_0, window_bounds = array<i64: 128, 32>}, {pipeline_mode = #tpu.pipeline_mode<synchronous>, transform_indices = @transform_1, window_bounds = array<i64: 1, 32>}, {transform_indices = @transform_2, window_bounds = array<i64: 1>}, {transform_indices = @transform_3, window_bounds = array<i64: 128, 1>}]} {
    %c0 = arith.constant 0 : index
    %c0_0 = arith.constant 0 : index
    %0 = vector.load %arg1[%c0, %c0_0] : memref<128x32xbf16, #tpu.memory_space<vmem>>, vector<128x32xbf16>
    %1 = arith.extf %0 : vector<128x32xbf16> to vector<128x32xf32>
    %c0_1 = arith.constant 0 : index
    %c0_2 = arith.constant 0 : index
    %2 = vector.load %arg2[%c0_1, %c0_2] : memref<1x32xbf16, #tpu.memory_space<vmem>>, vector<1x32xbf16>
    %3 = arith.extf %2 : vector<1x32xbf16> to vector<1x32xf32>
    %4 = vector.broadcast %3 : vector<1x32xf32> to vector<128x32xf32>
    %5 = arith.mulf %1, %4 : vector<128x32xf32>
    %cst = arith.constant dense<0.000000e+00> : vector<128xf32>
    %6 = vector.multi_reduction <add>, %5, %cst [1] : vector<128x32xf32> to vector<128xf32>
    %7 = vector.shape_cast %6 : vector<128xf32> to vector<128x1xf32>
    %c0_3 = arith.constant 0 : index
    %8 = memref.load %arg3[%c0_3] : memref<1xf32, #tpu.memory_space<smem>>
    %9 = vector.broadcast %8 : f32 to vector<128x1xf32>
    %10 = arith.addf %7, %9 : vector<128x1xf32>
    %c0_4 = arith.constant 0 : index
    %c0_5 = arith.constant 0 : index
    %11 = vector.load %arg4[%c0_4, %c0_5] : memref<128x1xf32, #tpu.memory_space<vmem>>, vector<128x1xf32>
    tpu.vector_store %arg4[%c0_4, %c0_5], %10 {strides = array<i32>} : memref<128x1xf32, #tpu.memory_space<vmem>>, vector<128x1xf32>,
    return
  }
  func.func @transform_0(%arg0: i32) -> (i32, i32) {
    %c0_i32 = arith.constant 0 : i32
    %c0_i32_0 = arith.constant 0 : i32
    return %arg0, %c0_i32 : i32, i32
  }
  func.func @transform_1(%arg0: i32) -> (i32, i32) {
    %c0_i32 = arith.constant 0 : i32
    %c0_i32_0 = arith.constant 0 : i32
    %c0_i32_1 = arith.constant 0 : i32
    return %c0_i32, %c0_i32_0 : i32, i32
  }
  func.func @transform_2(%arg0: i32) -> i32 {
    %c0_i32 = arith.constant 0 : i32
    %c0_i32_0 = arith.constant 0 : i32
    return %c0_i32 : i32
  }
  func.func @transform_3(%arg0: i32) -> (i32, i32) {
    %c0_i32 = arith.constant 0 : i32
    %c0_i32_0 = arith.constant 0 : i32
    return %arg0, %c0_i32 : i32, i32
  }
}

</mosaic_0001>

<bundles_post_ra>
// kernel: tpu_custom_call.1
= control target key start
LH: loop header
LB: loop body
LE: loop exit
PB: predicated region body
PF: predicated region fallthrough
CT: control target
= control target key end

     0   :  { %s458_s14 = smov 0   ;;  %s560_s0 = inlined_call_operand.vmem [shape: bf16[256,32], index: 0, kind: input, shape index: {}]   ;;  %s561_s1 = inlined_call_operand.vmem [shape: bf16[1,32], index: 1, kind: input, shape index: {}]   ;;  %s562_s2 = inlined_call_operand.<no memory space> [shape: f32[1], index: 2, kind: input, shape index: {}]   ;;  %s563_s3 = inlined_call_operand.vmem [shape: f32[256,1], index: 3, kind: output, shape index: {}]  }
   0x1   :  { %8 = sst [smem:[#allocation2]] %s562_s2 }
   0x2 LB: > { %s369_s15 = sadd.s32 4294967295, %s433_s14   ;;  %p373_p0 = scmp.ge.s32.totalorder %s433_s14, 1  ;;  %s433_s14 = sphi %s458_s14, %s14_s14  }
   0x3   : > { %p139_p1 = scmp.lt.s32.totalorder %s433_s14, 3 }
   0x5   : > { %p140_p2 = pnand %p373_p0, %p139_p1 }
   0x6   : > { %s374_s16 = sshll.u32 (!%p140_p2), %s369_s15, 4  ;;  %v207_v0 = vld [vmem:[%s561_s1] sm:$0x1] (!%p140_p2)  ;;  %v209_v1 = vlaneseq (!%p140_p2)  ;;  %vm229_vm0 = vcmask (!%p140_p2), 261120   ;;  %s278_s22 = sld [smem:[#allocation2]] (!%p140_p2)  ;;  %vm296_vm1 = vcmask (!%p140_p2), 7168  }
   0x7   : > { %143 = sbr.rel (%p140_p2) target bundleno = 196 (0xc4), region = 32  ;;  %p164_p3 = scmp.lt.s32.totalorder (!%p140_p2), %s374_s16, 31  ;;  %v208_v2 = vunpack.c.l.bf16 (!%p140_p2), %v207_v0 }
   0x8   : > { %v210_v3 = vshrl.u32 (!%p140_p2), %v209_v1, 7 }
   0xa   : > { %v211_v4 = vsub.s32 (!%p140_p2), 0, %v210_v3 }
   0xc   : > { %v477_v5 = vrot.slane (!%p140_p2), %v208_v2, %v211_v4  ;;  %v279_v62 = vstv (!%p140_p2), %s278_s22 }
   0xe   : > { %s565_s16 = smov (!%p164_p3, %s374_s16), 31 }
   0xf   : > { %s375_s2 = sshll.u32 %s565_s16, 2  ;;  %s377_s23 = sshll.u32 %s565_s16, 3 }
  0x10   : > { %s475_s21 = scalar_lea.vmem %s560_s0, %s375_s2  ;;  %s523_s26 = scalar_lea.vmem %s563_s3, %s377_s23 }
  0x11   : > { %v412_v6 = vld [vmem:[%s475_s21 + $0x8] sm:$0xff]   ;;  %v381_v7 = vld [vmem:[%s475_s21] sm:$0xff]   ;;  %v413_v8 = vld [vmem:[%s475_s21 + $0x10] sm:$0xff]  }
  0x12   : > { %v386_v9 = vunpack.c.l.bf16 %v412_v6  ;;  %v382_v10 = vunpack.c.l.bf16 %v381_v7  ;;  %v387_v11 = vunpack.c.h.bf16 %v412_v6  ;;  %v383_v12 = vunpack.c.h.bf16 %v381_v7  ;;  %v414_v19 = vld [vmem:[%s475_s21 + $0x18] sm:$0xff]   ;;  %v415_v28 = vld [vmem:[%s475_s21 + $0x20] sm:$0xff]   ;;  %v416_v35 = vld [vmem:[%s475_s21 + $0x28] sm:$0xff]  }
  0x13   : > { %v391_v13 = vunpack.c.h.bf16 %v413_v8  ;;  %v390_v14 = vunpack.c.l.bf16 %v413_v8  ;;  %v395_v22 = vunpack.c.h.bf16 %v414_v19  ;;  %v394_v23 = vunpack.c.l.bf16 %v414_v19  ;;  %v417_v42 = vld [vmem:[%s475_s21 + $0x30] sm:$0xff]   ;;  %v418_v49 = vld [vmem:[%s475_s21 + $0x38] sm:$0xff]  }
  0x14   : > { %v215_v15 = vmul.f32 %v386_v9, %v477_v5  ;;  %v213_v16 = vmul.f32 %v382_v10, %v477_v5  ;;  %v216_v17 = vmul.f32 %v387_v11, %v477_v5  ;;  %v214_v18 = vmul.f32 %v383_v12, %v477_v5 }
  0x15   : > { %v218_v26 = vmul.f32 %v391_v13, %v477_v5  ;;  %v217_v27 = vmul.f32 %v390_v14, %v477_v5  ;;  %v220_v29 = vmul.f32 %v395_v22, %v477_v5  ;;  %v219_v30 = vmul.f32 %v394_v23, %v477_v5 }
  0x16   : > { %v236_v20 = vsel %vm229_vm0, %v215_v15, 0.0  ;;  %v230_v21 = vsel %vm229_vm0, %v213_v16, 0.0  ;;  %v239_v24 = vsel %vm229_vm0, %v216_v17, 0.0  ;;  %v233_v25 = vsel %vm229_vm0, %v214_v18, 0.0 }
  0x17   : > { %237 = vadd.xlane.f32.xlu1 %v236_v20  ;;  %231 = vadd.xlane.f32.xlu0 %v230_v21  ;;  %v245_v31 = vsel %vm229_vm0, %v218_v26, 0.0  ;;  %v242_v32 = vsel %vm229_vm0, %v217_v27, 0.0  ;;  %v399_v33 = vunpack.c.h.bf16 %v415_v28  ;;  %v398_v34 = vunpack.c.l.bf16 %v415_v28 }
  0x18   : > { %v251_v36 = vsel %vm229_vm0, %v220_v29, 0.0  ;;  %v248_v37 = vsel %vm229_vm0, %v219_v30, 0.0  ;;  %v403_v40 = vunpack.c.h.bf16 %v416_v35  ;;  %v402_v41 = vunpack.c.l.bf16 %v416_v35 }
  0x19   : > { %v222_v38 = vmul.f32 %v399_v33, %v477_v5  ;;  %v221_v39 = vmul.f32 %v398_v34, %v477_v5  ;;  %v407_v43 = vunpack.c.h.bf16 %v417_v42  ;;  %v406_v44 = vunpack.c.l.bf16 %v417_v42 }
  0x1a   : > { %v224_v47 = vmul.f32 %v403_v40, %v477_v5  ;;  %v223_v48 = vmul.f32 %v402_v41, %v477_v5  ;;  %v411_v50 = vunpack.c.h.bf16 %v418_v49  ;;  %v410_v51 = vunpack.c.l.bf16 %v418_v49 }
  0x1b   : > { %240 = vadd.xlane.f32.xlu1 %v239_v24  ;;  %234 = vadd.xlane.f32.xlu0 %v233_v25  ;;  %v257_v45 = vsel %vm229_vm0, %v222_v38, 0.0  ;;  %v254_v46 = vsel %vm229_vm0, %v221_v39, 0.0  ;;  %v226_v54 = vmul.f32 %v407_v43, %v477_v5  ;;  %v225_v55 = vmul.f32 %v406_v44, %v477_v5 }
  0x1c   : > { %v263_v52 = vsel %vm229_vm0, %v224_v47, 0.0  ;;  %v260_v53 = vsel %vm229_vm0, %v223_v48, 0.0  ;;  %v228_v58 = vmul.f32 %v411_v50, %v477_v5  ;;  %v227_v59 = vmul.f32 %v410_v51, %v477_v5 }
  0x1d   : > { %v269_v56 = vsel %vm229_vm0, %v226_v54, 0.0  ;;  %v266_v57 = vsel %vm229_vm0, %v225_v55, 0.0 }
  0x1e   : > { %v275_v60 = vsel %vm229_vm0, %v228_v58, 0.0  ;;  %v272_v61 = vsel %vm229_vm0, %v227_v59, 0.0 }
  0x1f   : > { %246 = vadd.xlane.f32.xlu1 %v245_v31  ;;  %243 = vadd.xlane.f32.xlu0 %v242_v32 }
  0x23   : > { %252 = vadd.xlane.f32.xlu1 %v251_v36  ;;  %249 = vadd.xlane.f32.xlu0 %v248_v37 }
  0x27   : > { %258 = vadd.xlane.f32.xlu1 %v257_v45  ;;  %255 = vadd.xlane.f32.xlu0 %v254_v46 }
  0x2b   : > { %264 = vadd.xlane.f32.xlu1 %v263_v52  ;;  %261 = vadd.xlane.f32.xlu0 %v260_v53 }
  0x2f   : > { %270 = vadd.xlane.f32.xlu1 %v269_v56  ;;  %267 = vadd.xlane.f32.xlu0 %v266_v57 }
  0x33   : > { %276 = vadd.xlane.f32.xlu1 %v275_v60  ;;  %273 = vadd.xlane.f32.xlu0 %v272_v61 }
  0xa4   : > { %v238_v63 = vpop.xlane.xlu1 %237  ;;  %v232_v0 = vpop.xlane.xlu0 %231 }
  0xa5   : > { %v282_v1 = vadd.f32 %v279_v62, %v238_v63  ;;  %v280_v2 = vadd.f32 %v279_v62, %v232_v0 }
  0xa7   : > { %299 = vst.msk [vmem:[%s523_s26 + $0x10] sm:$0xff] %vm296_vm1, %v282_v1  ;;  %297 = vst.msk [vmem:[%s523_s26] sm:$0xff] %vm296_vm1, %v280_v2 }
  0xa8   : > { %v241_v3 = vpop.xlane.xlu1 %240  ;;  %v235_v4 = vpop.xlane.xlu0 %234 }
  0xa9   : > { %v283_v5 = vadd.f32 %v279_v62, %v241_v3  ;;  %v281_v6 = vadd.f32 %v279_v62, %v235_v4 }
  0xab   : > { %300 = vst.msk [vmem:[%s523_s26 + $0x18] sm:$0xff] %vm296_vm1, %v283_v5  ;;  %298 = vst.msk [vmem:[%s523_s26 + $0x8] sm:$0xff] %vm296_vm1, %v281_v6 }
  0xac   : > { %v247_v7 = vpop.xlane.xlu1 %246  ;;  %v244_v8 = vpop.xlane.xlu0 %243 }
  0xad   : > { %v285_v9 = vadd.f32 %v279_v62, %v247_v7  ;;  %v284_v10 = vadd.f32 %v279_v62, %v244_v8 }
  0xaf   : > { %302 = vst.msk [vmem:[%s523_s26 + $0x28] sm:$0xff] %vm296_vm1, %v285_v9  ;;  %301 = vst.msk [vmem:[%s523_s26 + $0x20] sm:$0xff] %vm296_vm1, %v284_v10 }
  0xb0   : > { %v253_v11 = vpop.xlane.xlu1 %252  ;;  %v250_v12 = vpop.xlane.xlu0 %249 }
  0xb1   : > { %v287_v13 = vadd.f32 %v279_v62, %v253_v11  ;;  %v286_v14 = vadd.f32 %v279_v62, %v250_v12 }
  0xb3   : > { %304 = vst.msk [vmem:[%s523_s26 + $0x38] sm:$0xff] %vm296_vm1, %v287_v13  ;;  %303 = vst.msk [vmem:[%s523_s26 + $0x30] sm:$0xff] %vm296_vm1, %v286_v14 }
  0xb4   : > { %v259_v15 = vpop.xlane.xlu1 %258  ;;  %v256_v16 = vpop.xlane.xlu0 %255 }
  0xb5   : > { %v289_v17 = vadd.f32 %v279_v62, %v259_v15  ;;  %v288_v18 = vadd.f32 %v279_v62, %v256_v16 }
  0xb7   : > { %306 = vst.msk [vmem:[%s523_s26 + $0x48] sm:$0xff] %vm296_vm1, %v289_v17  ;;  %305 = vst.msk [vmem:[%s523_s26 + $0x40] sm:$0xff] %vm296_vm1, %v288_v18 }
  0xb8   : > { %v265_v19 = vpop.xlane.xlu1 %264  ;;  %v262_v20 = vpop.xlane.xlu0 %261 }
  0xb9   : > { %v291_v21 = vadd.f32 %v279_v62, %v265_v19  ;;  %v290_v22 = vadd.f32 %v279_v62, %v262_v20 }
  0xbb   : > { %308 = vst.msk [vmem:[%s523_s26 + $0x58] sm:$0xff] %vm296_vm1, %v291_v21  ;;  %307 = vst.msk [vmem:[%s523_s26 + $0x50] sm:$0xff] %vm296_vm1, %v290_v22 }
  0xbc   : > { %v271_v23 = vpop.xlane.xlu1 %270  ;;  %v268_v24 = vpop.xlane.xlu0 %267 }
  0xbd   : > { %v293_v25 = vadd.f32 %v279_v62, %v271_v23  ;;  %v292_v26 = vadd.f32 %v279_v62, %v268_v24 }
  0xbf   : > { %310 = vst.msk [vmem:[%s523_s26 + $0x68] sm:$0xff] %vm296_vm1, %v293_v25  ;;  %309 = vst.msk [vmem:[%s523_s26 + $0x60] sm:$0xff] %vm296_vm1, %v292_v26 }
  0xc0   : > { %v277_v27 = vpop.xlane.xlu1 %276  ;;  %v274_v28 = vpop.xlane.xlu0 %273 }
  0xc1   : > { %v295_v29 = vadd.f32 %v279_v62, %v277_v27  ;;  %v294_v30 = vadd.f32 %v279_v62, %v274_v28 }
  0xc3   : > { %312 = vst.msk [vmem:[%s523_s26 + $0x78] sm:$0xff] %vm296_vm1, %v295_v29  ;;  %311 = vst.msk [vmem:[%s523_s26 + $0x70] sm:$0xff] %vm296_vm1, %v294_v30 }
  0xc4 PF: > { %s14_s14 = sadd.s32 1, %s433_s14  }
  0xc5   : > { %p11_p4 = scmp.ge.s32.totalorder %s14_s14, 4  }
  0xc7   :  { %13 = sbr.rel (!%p11_p4) target bundleno = 2 (0x2), region = 62 }

</bundles_post_ra>
